<compile_context>
chip_gen: v7x
topology: tpu7x:2x2x1
jax: 0.10.0
libtpu: 0.0.40
codegen_flags: <defaults>
</compile_context>

<pallas_src>
import functools
import numpy as np

import jax
import jax.numpy as jnp
from jax.experimental import pallas as pl
from jax.experimental.pallas import tpu as pltpu

# ----------------------- hyper-params (DeiT-tiny, scaled down) -----------------------
NUM_CLASSES = 10                 # anchor classes (hard-coded 10 in RobustQuoteModule)
DIM = 48                         # token dim      (deit-tiny: 192)
NUM_HEADS = 3                    # heads          (deit-tiny: 3)
HEAD_DIM = DIM // NUM_HEADS
MLP_HIDDEN = DIM * 4
IMG = 16
PATCH = 8
N_PATCH = (IMG // PATCH) ** 2
SEQ = N_PATCH + 1                # + cls token
SCALE = HEAD_DIM ** -0.5         # (dim // num_heads) ** -0.5
EPS = 1e-5                       # nn.LayerNorm default


# ================================  in-kernel helpers  ================================
def _ln(x, g, b):
    mu = jnp.mean(x, axis=-1, keepdims=True)
    var = jnp.mean((x - mu) ** 2, axis=-1, keepdims=True)
    return (x - mu) * jax.lax.rsqrt(var + EPS) * g + b


def _gelu_exact(x):
    # nn.GELU default (exact erf form).
    return 0.5 * x * (1.0 + jax.lax.erf(x * (2.0 ** -0.5)))


# =====================================  kernels  =====================================
def _linear_kernel(x_ref, w_ref, b_ref, o_ref):
    acc = jnp.dot(x_ref[...], w_ref[...], preferred_element_type=jnp.float32)
    o_ref[...] = (acc + b_ref[...]).astype(o_ref.dtype)


def _fused_module_head_kernel(x_ref, anc_ref, g1_ref, b1_ref, w_qv_ref, w_k_ref,
                              w_proj_ref, b_proj_ref, g2_ref, b2_ref,
                              w_fc1_ref, b_fc1_ref, w_fc2_ref, b_fc2_ref,
                              gf_ref, bf_ref, w_head_ref, b_head_ref,
                              out_ref, acls_ref, attn_ref, logits_ref,
                              *, scale, num_heads, num_classes, seq_len, batch):
    """Single-invocation fused RobustQuoteModule + final LN/head.

    x_ref     : (B*N, C)        batch tokens (pre-norm1), rows ordered (b, token)
    anc_ref   : (nc*N, C)       anchor tokens (pre-norm1), rows ordered (class, token)
    out_ref   : (B*N, C)        module output tokens (attention-out + MLP residual)
    acls_ref  : (B, nc, H)      softmaxed class weights (kernel-natural layout)
    attn_ref  : (B, H, N, nc*N) softmaxed attention maps (lane-dense slab per head)
    logits_ref: (2B, 10)        rows 0..B-1 = quotes (module cls), B..2B-1 = passthrough
    """
    H, nc, N, B = num_heads, num_classes, seq_len, batch
    C = x_ref.shape[-1]
    Dh = C // H

    g1 = g1_ref[...]
    b1 = b1_ref[...]

    # ---- batch-invariant anchor path: LayerNorm + qv projection, once per call ----
    ancn = _ln(anc_ref[...].astype(jnp.float32), g1, b1)                        # (nc*N, C)
    anc_qv = jnp.dot(ancn, w_qv_ref[...], preferred_element_type=jnp.float32)   # (nc*N, 2C)

    # ---- per-token path, batched over all B*N rows ----
    x_all = x_ref[...].astype(jnp.float32)                                      # (B*N, C)
    xn = _ln(x_all, g1, b1)
    k_all = jnp.dot(xn, w_k_ref[...], preferred_element_type=jnp.float32)       # (B*N, C)

    # ---- tiny constant selector / expansion matrices (built once via iota) ----
    r0 = jax.lax.broadcasted_iota(jnp.int32, (nc, nc * N), 0)
    c0 = jax.lax.broadcasted_iota(jnp.int32, (nc, nc * N), 1)
    sel = (c0 == r0 * N).astype(jnp.float32)           # sel[c, r]   = [r == c*N]
    r1 = jax.lax.broadcasted_iota(jnp.int32, (nc * N, nc), 0)
    c1 = jax.lax.broadcasted_iota(jnp.int32, (nc * N, nc), 1)
    rep_t = (r1 // N == c1).astype(jnp.float32)        # rep_t[r, c] = [r // N == c]

    x_att_rows = []
    for b in range(B):
        k_b = k_all[b * N:(b + 1) * N, :]                                        # (N, C)

        # raw scaled scores per head: s_h[c*N + i, j]
        s_heads = []
        for h in range(H):
            s = jax.lax.dot_general(
                anc_qv[:, h * Dh:(h + 1) * Dh], k_b[:, h * Dh:(h + 1) * Dh],
                (((1,), (1,)), ((), ())),
                preferred_element_type=jnp.float32) * scale                      # (nc*N, N)
            s_heads.append(s)

        # class weights (attn_cls): raw score of each anchor cls token vs x cls token
        s0 = jnp.concatenate([s[:, 0:1] for s in s_heads], axis=1)               # (nc*N, H)
        lg = jnp.dot(sel, s0, preferred_element_type=jnp.float32)                # (nc, H)
        lg = lg - jnp.max(lg, axis=0, keepdims=True)
        le = jnp.exp(lg)
        w_t = le / jnp.sum(le, axis=0, keepdims=True)                            # (nc, H)
        acls_ref[b] = w_t.astype(acls_ref.dtype)

        # expand class weights onto anchor rows: w_col[c*N + j, h] = w[h, c]
        w_col = jnp.dot(rep_t, w_t, preferred_element_type=jnp.float32)          # (nc*N, H)

        outs = []
        for h in range(H):
            s = s_heads[h]
            m = jnp.max(s, axis=-1, keepdims=True)
            e = jnp.exp(s - m)
            p = e / jnp.sum(e, axis=-1, keepdims=True)                           # (nc*N, N)
            # column-block relayout: a[i, c*N + j] = p[c*N + i, j]
            a = jnp.concatenate([p[c * N:(c + 1) * N, :] for c in range(nc)], axis=1)
            attn_ref[b, h] = a.astype(attn_ref.dtype)                            # (N, nc*N)
            v_h = anc_qv[:, C + h * Dh: C + (h + 1) * Dh]                        # (nc*N, Dh)
            outs.append(jnp.dot(a, v_h * w_col[:, h:h + 1],
                                preferred_element_type=jnp.float32))             # (N, Dh)
        x_att_rows.append(jnp.concatenate(outs, axis=-1))                        # (N, C)

    x_att = jnp.concatenate(x_att_rows, axis=0)                                  # (B*N, C)
    xa = jnp.dot(x_att, w_proj_ref[...],
                 preferred_element_type=jnp.float32) + b_proj_ref[...]

    # ---- MLP (norm2 -> fc1 -> GELU -> fc2), residual from the attention output ----
    hdn = _ln(xa, g2_ref[...], b2_ref[...])
    hdn = jnp.dot(hdn, w_fc1_ref[...], preferred_element_type=jnp.float32) + b_fc1_ref[...]
    hdn = _gelu_exact(hdn)
    hdn = jnp.dot(hdn, w_fc2_ref[...], preferred_element_type=jnp.float32) + b_fc2_ref[...]
    out_rows = xa + hdn                                                          # (B*N, C)
    out_ref[...] = out_rows.astype(out_ref.dtype)

    # ---- fused final LayerNorm + classifier head on cls rows (quotes + passthrough) ----
    cls_rows = jnp.concatenate(
        [out_rows[b * N:b * N + 1, :] for b in range(B)]
        + [x_all[b * N:b * N + 1, :] for b in range(B)], axis=0)                 # (2B, C)
    logits = jnp.dot(_ln(cls_rows, gf_ref[...], bf_ref[...]), w_head_ref[...],
                     preferred_element_type=jnp.float32) + b_head_ref[...]
    logits_ref[...] = logits.astype(logits_ref.dtype)


# ====================================  wrappers  =====================================
def _vmem():
    return pl.BlockSpec(memory_space=pltpu.MemorySpace.VMEM)


def pallas_linear(x2d, w, b):
    """x2d (M, K) @ w (K, N) + b (N,) — weights stored pre-transposed vs PyTorch."""
    M, K = x2d.shape
    N = w.shape[1]
    return pl.pallas_call(
        _linear_kernel,
        in_specs=[_vmem()] * 3,
        out_specs=_vmem(),
        out_shape=jax.ShapeDtypeStruct((M, N), x2d.dtype),
    )(x2d, w, b.reshape(1, N))


def fused_forward(x_tokens, anchor_tokens, p):
    """x_tokens: (B, N, C), anchor_tokens: (nc, N, C) — both pre-norm1."""
    B, N, C = x_tokens.shape
    nc = anchor_tokens.shape[0]
    H = NUM_HEADS
    kernel = functools.partial(_fused_module_head_kernel, scale=SCALE, num_heads=H,
                               num_classes=nc, seq_len=N, batch=B)
    out_rows, acls_t, attn_slab, logits = pl.pallas_call(
        kernel,
        in_specs=[_vmem()] * 18,
        out_specs=[_vmem()] * 4,
        out_shape=[
            jax.ShapeDtypeStruct((B * N, C), jnp.float32),
            jax.ShapeDtypeStruct((B, nc, H), jnp.float32),
            jax.ShapeDtypeStruct((B, H, N, nc * N), jnp.float32),
            jax.ShapeDtypeStruct((2 * B, NUM_CLASSES), jnp.float32),
        ],
    )(x_tokens.reshape(B * N, C), anchor_tokens.reshape(nc * N, C),
      p['g1'].reshape(1, C), p['b1'].reshape(1, C),
      p['w_qv'], p['w_k'],
      p['w_proj'], p['b_proj'].reshape(1, C),
      p['g2'].reshape(1, C), p['b2'].reshape(1, C),
      p['w_fc1'], p['b_fc1'].reshape(1, MLP_HIDDEN),
      p['w_fc2'], p['b_fc2'].reshape(1, C),
      p['g_f'].reshape(1, C), p['b_f'].reshape(1, C),
      p['w_head'], p['b_head'].reshape(1, NUM_CLASSES))

    out = out_rows.reshape(B, N, C)
    attn_cls = jnp.transpose(acls_t, (0, 2, 1))                                  # (B, H, nc)
    attn = jnp.transpose(attn_slab.reshape(B, H, N, nc, N), (3, 0, 1, 2, 4))     # (nc,B,H,N,N)
    return out, attn_cls, attn, logits[:B], logits[B:]


# ==================================  model (glue)  ===================================
def patch_embed(imgs, p):
    """Conv2d(patch, stride=patch) as a Pallas matmul over flattened patches + cls/pos."""
    M = imgs.shape[0]
    g = IMG // PATCH
    xp = imgs.reshape(M, 3, g, PATCH, g, PATCH)
    xp = jnp.transpose(xp, (0, 2, 4, 1, 3, 5)).reshape(M * g * g, 3 * PATCH * PATCH)
    tok = pallas_linear(xp, p['w_pe'], p['b_pe']).reshape(M, g * g, DIM)
    cls = jnp.broadcast_to(p['cls_token'], (M, 1, DIM))
    return jnp.concatenate([cls, tok], axis=1) + p['pos_embed']


def robust_quote_net_forward(x, anchors, p):
    """Mirrors RobustQuoteNet.forward: concat batch with anchors, run backbone, return quotes."""
    B = x.shape[0]
    imgs = jnp.concatenate([x, anchors], axis=0)                  # (B + nc, 3, H, W)
    tokens = patch_embed(imgs, p)                                 # (B + nc, SEQ, DIM)
    # TODO(synk): the pretrained DeiT-tiny transformer blocks surrounding the robust block
    # require a checkpoint and are not reproduced; only the inserted RobustQuoteModule
    # plus the final LN + head (the novel compute path) is implemented — as one fused kernel.
    x_tok, anc_tok = tokens[:B], tokens[B:]
    _, attn_cls, attn, quotes, passthrough = fused_forward(x_tok, anc_tok, p)
    extras = [attn_cls, attn, quotes, passthrough]                # = self.extra_outputs[0]
    return quotes, extras


# =================================  params & checks  =================================
def init_params(key):
    ks = jax.random.split(key, 16)
    def n(k, shape, s=0.02):
        return s * jax.random.normal(k, shape, jnp.float32)
    return dict(
        # backbone stub
        w_pe=n(ks[0], (3 * PATCH * PATCH, DIM), 0.05), b_pe=n(ks[1], (DIM,)),
        cls_token=n(ks[2], (1, 1, DIM)), pos_embed=n(ks[3], (1, SEQ, DIM)),
        g_f=jnp.ones((DIM,), jnp.float32), b_f=jnp.zeros((DIM,), jnp.float32),
        w_head=n(ks[12], (DIM, NUM_CLASSES), 0.05), b_head=n(ks[13], (NUM_CLASSES,)),
        # RobustQuoteModule (weights stored as (in, out), i.e. transposed vs. PyTorch)
        g1=jnp.ones((DIM,), jnp.float32), b1=jnp.zeros((DIM,), jnp.float32),
        g2=jnp.ones((DIM,), jnp.float32), b2=jnp.zeros((DIM,), jnp.float32),
        w_qv=n(ks[4], (DIM, 2 * DIM), 0.05),
        w_k=n(ks[5], (DIM, DIM), 0.05),
        w_proj=n(ks[6], (DIM, DIM), 0.05), b_proj=n(ks[7], (DIM,)),
        w_fc1=n(ks[8], (DIM, MLP_HIDDEN), 0.05), b_fc1=n(ks[9], (MLP_HIDDEN,)),
        w_fc2=n(ks[10], (MLP_HIDDEN, DIM), 0.05), b_fc2=n(ks[11], (DIM,)),
    )


def _module_reference(x_tokens, anchor_tokens, p):
    """Pure-jnp mirror of RobustQuoteModule's attention + MLP (for sanity checking)."""
    def ln(t, g, b):
        mu = t.mean(-1, keepdims=True)
        var = ((t - mu) ** 2).mean(-1, keepdims=True)
        return (t - mu) / jnp.sqrt(var + EPS) * g + b
    B, N, C = x_tokens.shape
    nc, H, Dh = NUM_CLASSES, NUM_HEADS, HEAD_DIM
    xn = ln(x_tokens, p['g1'], p['b1'])
    an = ln(anchor_tokens, p['g1'], p['b1'])
    qv = (an.reshape(nc * N, C) @ p['w_qv']).reshape(nc, N, 2, H, Dh)
    q = jnp.transpose(qv[:, :, 0], (0, 2, 1, 3))                       # (nc, H, N, Dh)
    v = jnp.transpose(qv[:, :, 1], (0, 2, 1, 3))
    k = jnp.transpose((xn.reshape(B * N, C) @ p['w_k']).reshape(B, N, H, Dh), (0, 2, 1, 3))
    attn_raw = jnp.einsum('chqd,bhkd->cbhqk', q, k) * SCALE
    attn_cls = jax.nn.softmax(jnp.transpose(attn_raw[:, :, :, 0, 0], (1, 2, 0)), axis=-1)
    attn = jax.nn.softmax(attn_raw, axis=-1)
    xo = jnp.einsum('cbhqk,chkd->cbhqd', attn, v)
    xw = jnp.einsum('cbhqd,bhc->bhqd', xo, attn_cls)
    xa = jnp.transpose(xw, (0, 2, 1, 3)).reshape(B, N, C) @ p['w_proj'] + p['b_proj']
    h = ln(xa, p['g2'], p['b2'])
    h = h @ p['w_fc1'] + p['b_fc1']
    h = jax.nn.gelu(h, approximate=False)
    h = h @ p['w_fc2'] + p['b_fc2']
    return xa + h, attn_cls, attn


if __name__ == "__main__":
    key = jax.random.PRNGKey(0)
    k_x, k_a, k_p, k_t1, k_t2 = jax.random.split(key, 5)

    x = jax.random.normal(k_x, (2, 3, IMG, IMG), jnp.float32)              # NCHW batch
    anchors = jax.random.normal(k_a, (NUM_CLASSES, 3, IMG, IMG), jnp.float32)
    params = init_params(k_p)

    quotes, extras = robust_quote_net_forward(x, anchors, params)
    quotes = jax.block_until_ready(quotes)
    assert quotes.shape == (2, NUM_CLASSES)
    assert extras[0].shape == (2, NUM_HEADS, NUM_CLASSES)                  # attn_cls
    assert extras[1].shape == (NUM_CLASSES, 2, NUM_HEADS, SEQ, SEQ)        # attn (PyTorch order)
    assert extras[2].shape == (2, NUM_CLASSES) and extras[3].shape == (2, NUM_CLASSES)

    # sanity-check the fused kernel against a pure-jnp reference
    xt = jax.random.normal(k_t1, (2, SEQ, DIM), jnp.float32)
    at = jax.random.normal(k_t2, (NUM_CLASSES, SEQ, DIM), jnp.float32)
    out_k, acls_k, attn_k, quotes_k, pass_k = fused_forward(xt, at, params)
    out_r, acls_r, attn_r = _module_reference(xt, at, params)

    def _ln_host(t, g, b):
        mu = t.mean(-1, keepdims=True)
        var = ((t - mu) ** 2).mean(-1, keepdims=True)
        return (t - mu) / jnp.sqrt(var + EPS) * g + b

    cls_rows_r = jnp.concatenate([out_r[:, 0, :], xt[:, 0, :]], axis=0)
    logits_r = _ln_host(cls_rows_r, params['g_f'], params['b_f']) @ params['w_head'] + params['b_head']

    got = (out_k, acls_k, attn_k, quotes_k, pass_k)
    want = (out_r, acls_r, attn_r, logits_r[:2], logits_r[2:])
    for g_, w_ in zip(got, want):
        np.testing.assert_allclose(np.asarray(g_), np.asarray(w_), rtol=2e-2, atol=2e-3)

    print("KERNEL_OK")
</pallas_src>

<mosaic_0001>
module attributes {stable_mosaic.version = 11 : i64} {
  func.func @_linear_kernel(%arg0: memref<48x192xf32, #tpu.memory_space<vmem>>, %arg1: memref<192x48xf32, #tpu.memory_space<vmem>>, %arg2: memref<1x48xf32, #tpu.memory_space<vmem>>, %arg3: memref<48x48xf32, #tpu.memory_space<vmem>>) attributes {dimension_semantics = [], scalar_prefetch = 0 : i64, scratch_operands = 0 : i64, tpu.core_type = #tpu.core_type<tc>} {
    %c0 = arith.constant 0 : index
    %c0_0 = arith.constant 0 : index
    %0 = vector.load %arg0[%c0, %c0_0] : memref<48x192xf32, #tpu.memory_space<vmem>>, vector<48x192xf32>
    %c0_1 = arith.constant 0 : index
    %c0_2 = arith.constant 0 : index
    %1 = vector.load %arg1[%c0_1, %c0_2] : memref<192x48xf32, #tpu.memory_space<vmem>>, vector<192x48xf32>
    %cst = arith.constant dense<0.000000e+00> : vector<48x48xf32>
    %2 = tpu.matmul %0, %1, %cst {dimension_numbers = #tpu.dot_dimension_numbers<[1], [0], [0], [1], [0, 0, 1, 1], [], []>} : vector<48x192xf32>, vector<192x48xf32>, vector<48x48xf32> -> vector<48x48xf32>
    %c0_3 = arith.constant 0 : index
    %c0_4 = arith.constant 0 : index
    %3 = vector.load %arg2[%c0_3, %c0_4] : memref<1x48xf32, #tpu.memory_space<vmem>>, vector<1x48xf32>
    %4 = vector.broadcast %3 : vector<1x48xf32> to vector<48x48xf32>
    %5 = arith.addf %2, %4 : vector<48x48xf32>
    %c0_5 = arith.constant 0 : index
    %c0_6 = arith.constant 0 : index
    %6 = vector.load %arg3[%c0_5, %c0_6] : memref<48x48xf32, #tpu.memory_space<vmem>>, vector<48x48xf32>
    tpu.vector_store %arg3[%c0_5, %c0_6], %5 {strides = array<i32>} : memref<48x48xf32, #tpu.memory_space<vmem>>, vector<48x48xf32>,
    return
  }
}

</mosaic_0001>

<bundles_post_ra>
// kernel: tpu_custom_call.1
= control target key start
LH: loop header
LB: loop body
LE: loop exit
PB: predicated region body
PF: predicated region fallthrough
CT: control target
= control target key end

     0   :  { %v290_v3 = vmov 0.0|0.0   ;;  %vm58_vm0 = vcmask 523264   ;;  %s473_s0 = inlined_call_operand.vmem [shape: f32[48,192], index: 0, kind: input, shape index: {}]   ;;  %s474_s1 = inlined_call_operand.vmem [shape: f32[192,48], index: 1, kind: input, shape index: {}]   ;;  %s475_s2 = inlined_call_operand.vmem [shape: f32[1,48], index: 2, kind: input, shape index: {}]   ;;  %s476_s3 = inlined_call_operand.hbm [shape: f32[48,48], index: 3, kind: output, shape index: {}]  }
   0x1   :  { %v27_v0 = vld [vmem:[%s474_s1] sm:$0xff]  ;;  %v28_v1 = vld [vmem:[%s474_s1 + $0x8] sm:$0xff]  ;;  %v29_v2 = vld [vmem:[%s474_s1 + $0x10] sm:$0xff]  ;;  %202 = vmatprep.subr.bf16.mxu0 %v290_v3  ;;  %238 = vmatprep.subr.bf16.mxu1 %v290_v3 }
   0x2   :  { %v203_v4 = vpack.c.bf16 %v28_v1, %v27_v0  ;;  %v30_v5 = vld [vmem:[%s474_s1 + $0x18] sm:$0xff]  ;;  %v31_v7 = vld [vmem:[%s474_s1 + $0x20] sm:$0xff]  ;;  %v32_v8 = vld [vmem:[%s474_s1 + $0x28] sm:$0xff] }
   0x3   :  { %v206_v6 = vpack.c.bf16 %v30_v5, %v29_v2  ;;  %v209_v9 = vpack.c.bf16 %v32_v8, %v31_v7  ;;  %v33_v10 = vld [vmem:[%s474_s1 + $0x30] sm:$0xff]  ;;  %v34_v11 = vld [vmem:[%s474_s1 + $0x38] sm:$0xff]  ;;  %v16_v12 = vld [vmem:[%s473_s0 + $0x8] sm:$0xff] }
   0x4   :  { %204 = vmatpush1.bf16.msra.mxu0 %v203_v4  ;;  %250 = vmatpush1.bf16.msra.mxu1 %v203_v4  ;;  %v22_v13 = vld [vmem:[%s473_s0 + $0x38] sm:$0xff]  ;;  %v212_v14 = vpack.c.bf16 %v34_v11, %v33_v10  ;;  %v35_v15 = vld [vmem:[%s474_s1 + $0x40] sm:$0xff]  ;;  %v36_v16 = vld [vmem:[%s474_s1 + $0x48] sm:$0xff] }
   0x5   :  { %205 = vmatprep.subr.bf16.mxu0 %v290_v3  ;;  %239 = vmatprep.subr.bf16.mxu1 %v290_v3 }
   0x6   :  { %196 = vmatprep.mubr.msk.f32.mxu0 %vm58_vm0, %v16_v12  ;;  %199 = vmatprep.mubr.msk.f32.mxu1 %vm58_vm0, %v22_v13 }
   0x8   :  { %207 = vmatpush1.bf16.msra.mxu0 %v206_v6  ;;  %251 = vmatpush1.bf16.msra.mxu1 %v206_v6 }
   0x9   :  { %208 = vmatprep.subr.bf16.mxu0 %v290_v3  ;;  %240 = vmatprep.subr.bf16.mxu1 %v290_v3 }
   0xc   :  { %210 = vmatpush1.bf16.msra.mxu0 %v209_v9  ;;  %252 = vmatpush1.bf16.msra.mxu1 %v209_v9 }
   0xd   :  { %211 = vmatprep.subr.bf16.mxu0 %v290_v3  ;;  %241 = vmatprep.subr.bf16.mxu1 %v290_v3 }
   0xe   :  { %8 = vsyncpa [#allocation3], 0  ;;  %v215_v17 = vpack.c.bf16 %v36_v16, %v35_v15  ;;  %v37_v18 = vld [vmem:[%s474_s1 + $0x50] sm:$0xff]  ;;  %v38_v19 = vld [vmem:[%s474_s1 + $0x58] sm:$0xff]  ;;  %vm172_vm1 = vcmask 392192  }
   0xf   :  { %v218_v20 = vpack.c.bf16 %v38_v19, %v37_v18  ;;  %v39_v21 = vld [vmem:[%s474_s1 + $0x60] sm:$0xff]  ;;  %v40_v22 = vld [vmem:[%s474_s1 + $0x68] sm:$0xff]  ;;  %v41_v24 = vld [vmem:[%s474_s1 + $0x70] sm:$0xff] }
  0x10   :  { %213 = vmatpush1.bf16.msra.mxu0 %v212_v14  ;;  %253 = vmatpush1.bf16.msra.mxu1 %v212_v14  ;;  %v221_v23 = vpack.c.bf16 %v40_v22, %v39_v21  ;;  %v42_v25 = vld [vmem:[%s474_s1 + $0x78] sm:$0xff]  ;;  %v43_v27 = vld [vmem:[%s474_s1 + $0x80] sm:$0xff]  ;;  %v44_v28 = vld [vmem:[%s474_s1 + $0x88] sm:$0xff] }
  0x11   :  { %214 = vmatprep.subr.bf16.mxu0 %v290_v3  ;;  %242 = vmatprep.subr.bf16.mxu1 %v290_v3  ;;  %v224_v26 = vpack.c.bf16 %v42_v25, %v41_v24  ;;  %v227_v29 = vpack.c.bf16 %v44_v28, %v43_v27  ;;  %v45_v30 = vld [vmem:[%s474_s1 + $0x90] sm:$0xff]  ;;  %v46_v31 = vld [vmem:[%s474_s1 + $0x98] sm:$0xff]  ;;  %v47_v33 = vld [vmem:[%s474_s1 + $0xa0] sm:$0xff] }
  0x12   :  { %v230_v32 = vpack.c.bf16 %v46_v31, %v45_v30  ;;  %v48_v34 = vld [vmem:[%s474_s1 + $0xa8] sm:$0xff]  ;;  %v49_v36 = vld [vmem:[%s474_s1 + $0xb0] sm:$0xff]  ;;  %v50_v37 = vld [vmem:[%s474_s1 + $0xb8] sm:$0xff] }
  0x13   :  { %v233_v35 = vpack.c.bf16 %v48_v34, %v47_v33  ;;  %v236_v38 = vpack.c.bf16 %v50_v37, %v49_v36  ;;  %v15_v39 = vld [vmem:[%s473_s0] sm:$0xff]  ;;  %v21_v40 = vld [vmem:[%s473_s0 + $0x30] sm:$0xff]  ;;  %v18_v41 = vld [vmem:[%s473_s0 + $0x18] sm:$0xff] }
  0x14   :  { %216 = vmatpush1.bf16.msra.mxu0 %v215_v17  ;;  %254 = vmatpush1.bf16.msra.mxu1 %v215_v17  ;;  %v24_v42 = vld [vmem:[%s473_s0 + $0x48] sm:$0xff]  ;;  %v17_v43 = vld [vmem:[%s473_s0 + $0x10] sm:$0xff]  ;;  %v23_v44 = vld [vmem:[%s473_s0 + $0x40] sm:$0xff] }
  0x15   :  { %217 = vmatprep.subr.bf16.mxu0 %v290_v3  ;;  %243 = vmatprep.subr.bf16.mxu1 %v290_v3  ;;  %v20_v45 = vld [vmem:[%s473_s0 + $0x28] sm:$0xff]  ;;  %v26_v46 = vld [vmem:[%s473_s0 + $0x58] sm:$0xff]  ;;  %v19_v47 = vld [vmem:[%s473_s0 + $0x20] sm:$0xff] }
  0x16   :  { %v25_v48 = vld [vmem:[%s473_s0 + $0x50] sm:$0xff]  ;;  %v195_v49 = vld [vmem:[%s475_s2] ss:$0 sm:$0xff]  ;;  %s291_s0 = smov [#allocation2]  }
  0x17   :  { %s184_s4 = sshll.u32 %s291_s0, 4  ;;  %s185_s4 = int_to_ptr.vmem [resolvable:$true] %s184_s4 }
  0x18   :  { %219 = vmatpush1.bf16.msra.mxu0 %v218_v20  ;;  %255 = vmatpush1.bf16.msra.mxu1 %v218_v20  ;;  %s266_s2 = scalar_lea.vmem %s185_s4, 768  ;;  %p271_p1 = scmp.lt.s32.totalorder %s185_s4, %s185_s4 }
  0x19   :  { %220 = vmatprep.subr.bf16.mxu0 %v290_v3  ;;  %244 = vmatprep.subr.bf16.mxu1 %v290_v3  ;;  %p267_p0 = scmp.ne.s32.totalorder %s185_s4, %s266_s2  ;;  %p272_p2 = scmp.lt.s32.totalorder %s266_s2, %s266_s2 }
  0x1b   :  { %p273_p3 = por %p272_p2, %p271_p1 }
  0x1c   :  { %222 = vmatpush1.bf16.msra.mxu0 %v221_v23  ;;  %256 = vmatpush1.bf16.msra.mxu1 %v221_v23 }
  0x1d   :  { %223 = vmatprep.subr.bf16.mxu0 %v290_v3  ;;  %245 = vmatprep.subr.bf16.mxu1 %v290_v3  ;;  %p274_p4 = pnand %p273_p3, %p267_p0 }
  0x20   :  { %225 = vmatpush1.bf16.msra.mxu0 %v224_v26  ;;  %257 = vmatpush1.bf16.msra.mxu1 %v224_v26 }
  0x21   :  { %226 = vmatprep.subr.bf16.mxu0 %v290_v3  ;;  %246 = vmatprep.subr.bf16.mxu1 %v290_v3 }
  0x24   :  { %228 = vmatpush1.bf16.msra.mxu0 %v227_v29  ;;  %258 = vmatpush1.bf16.msra.mxu1 %v227_v29 }
  0x25   :  { %229 = vmatprep.subr.bf16.mxu0 %v290_v3  ;;  %247 = vmatprep.subr.bf16.mxu1 %v290_v3 }
  0x28   :  { %231 = vmatpush1.bf16.msra.mxu0 %v230_v32  ;;  %259 = vmatpush1.bf16.msra.mxu1 %v230_v32 }
  0x29   :  { %232 = vmatprep.subr.bf16.mxu0 %v290_v3  ;;  %248 = vmatprep.subr.bf16.mxu1 %v290_v3 }
  0x2c   :  { %234 = vmatpush1.bf16.msra.mxu0 %v233_v35  ;;  %260 = vmatpush1.bf16.msra.mxu1 %v233_v35 }
  0x2d   :  { %235 = vmatprep.subr.bf16.mxu0 %v290_v3  ;;  %249 = vmatprep.subr.bf16.mxu1 %v290_v3 }
  0x30   :  { %237 = vmatpush1.bf16.msra.mxu0 %v236_v38  ;;  %261 = vmatpush1.bf16.msra.mxu1 %v236_v38 }
  0x33   :  { %142 = vmatmul.mubr.f32.vlgmr.msra.gmra.mrb[0].mxu0 %v15_v39  ;;  %157 = vmatmul.mubr.f32.vlgmr.msra.gmra.mrb[0].mxu1 %v21_v40 }
  0x34   :  { %197 = vmatprep.mubr.msk.f32.mxu0 %vm58_vm0, %v18_v41  ;;  %200 = vmatprep.mubr.msk.f32.mxu1 %vm58_vm0, %v24_v42 }
  0x37   :  { %147 = vmatmul.mubr.f32.gmra.mrb[2].mxu0 %v17_v43  ;;  %162 = vmatmul.mubr.f32.gmra.mrb[2].mxu1 %v23_v44 }
  0x38   :  { %198 = vmatprep.mubr.msk.f32.mxu0 %vm58_vm0, %v20_v45  ;;  %201 = vmatprep.mubr.msk.f32.mxu1 %vm58_vm0, %v26_v46 }
  0x3b   :  { %152 = vmatmul.mubr.f32.gmra.mrb[4].mxu0 %v19_v47  ;;  %167 = vmatmul.mubr.f32.gmra.mrb[4].mxu1 %v25_v48 }
 0x106   :  { %v143_v50 = vpop.f32.mrb[0].mxu0  ;;  %v158_v51 = vpop.f32.mrb[0].mxu1 }
 0x107   :  { %v144_v52 = vadd.f32 %v195_v49, %v143_v50  ;;  %v159_v53 = vadd.f32 %v195_v49, %v158_v51  ;;  %v145_v54 = vpop.f32.mrb[1].mxu0  ;;  %v160_v55 = vpop.f32.mrb[1].mxu1 }
 0x109   :  { %173 = vst.msk [vmem:[#allocation2] sm:$0xff] %vm172_vm1, %v144_v52  ;;  %176 = vst.msk [vmem:[#allocation2 + $0x18] sm:$0xff] %vm172_vm1, %v159_v53 }
 0x10a   :  { %v148_v56 = vpop.f32.mrb[2].mxu0  ;;  %v163_v57 = vpop.f32.mrb[2].mxu1 }
 0x10b   :  { %v149_v58 = vadd.f32 %v195_v49, %v148_v56  ;;  %v164_v59 = vadd.f32 %v195_v49, %v163_v57  ;;  %v150_v60 = vpop.f32.mrb[3].mxu0  ;;  %v165_v61 = vpop.f32.mrb[3].mxu1 }
 0x10d   :  { %174 = vst.msk [vmem:[#allocation2 + $0x8] sm:$0xff] %vm172_vm1, %v149_v58  ;;  %177 = vst.msk [vmem:[#allocation2 + $0x20] sm:$0xff] %vm172_vm1, %v164_v59 }
 0x10e   :  { %v153_v62 = vpop.f32.mrb[4].mxu0  ;;  %v168_v63 = vpop.f32.mrb[4].mxu1 }
 0x10f   :  { %v154_v0 = vadd.f32 %v195_v49, %v153_v62  ;;  %v169_v1 = vadd.f32 %v195_v49, %v168_v63  ;;  %v155_v2 = vpop.f32.mrb[5].mxu0  ;;  %v170_v3 = vpop.f32.mrb[5].mxu1 }
 0x111   :  { %175 = vst.msk [vmem:[#allocation2 + $0x10] sm:$0xff] %vm172_vm1, %v154_v0  ;;  %178 = vst.msk [vmem:[#allocation2 + $0x28] sm:$0xff] %vm172_vm1, %v169_v1 }
 0x112   :  { %277 = shalt.err (!%p274_p4)
}
 0x113   :  { %s278_s7 = scalar_lea.hbm %s476_s3, 768 }
 0x114   :  { %p279_p5 = scmp.ne.s32.totalorder %s476_s3, %s278_s7  ;;  %p282_p6 = scmp.lt.u32.totalorder %s278_s7, %s476_s3 }
 0x116   :  { %p284_p7 = pnand %p282_p6, %p279_p5 }
 0x118   :  { %287 = shalt.err (!%p284_p7)
}
 0x119   :  { %s292_s12 = smov 128   ;;  %s293_s13 = smov 8  }
 0x11a   :  { %190 = dma.vmem_to_hbm [thread:$0]  %s185_s4, 768, %s476_s3, [#allocation3], %s292_s12, %s292_s12, %s293_s13  }
 0x11b   :  { %288 = dma.done.wait [#allocation3], 768  }
 0x11c   :  { %289 = vsyncadd [#allocation3], 4294966528 }
 0x11d   :  { %194 = vsyncpa [#allocation3], 1 }

</bundles_post_ra>
